<compile_context>
chip_gen: v7x
topology: tpu7x:2x2x1
jax: 0.10.0
libtpu: 0.0.40
codegen_flags: <defaults>
</compile_context>

<pallas_src>
import functools

import jax
import jax.numpy as jnp
from jax import lax
from jax.experimental import pallas as pl
from jax.experimental.pallas import tpu as pltpu


def _focal_loss_kernel(x_ref, t_ref, out_ref, *, gamma, gamma_is_int, alpha,
                       C, ts, hw_valid, needs_mask, out_rows):
    tgt = t_ref[...].astype(jnp.int32)                     # (BN, ts, 128)

    # ---- log-softmax over classes via an unrolled per-class loop ----------
    # pass 1: running max over classes (numerical stabilizer)
    m = x_ref[:, 0, :, :].astype(jnp.float32)              # (BN, ts, 128)
    for c in range(1, C):
        m = jnp.maximum(m, x_ref[:, c, :, :].astype(jnp.float32))

    # pass 2: sum(exp(x_c - m)); gather (x_t - m) and alpha_t via per-class
    # selects with scalar constants (no one-hot / iota temporaries).
    sumexp = jnp.zeros_like(m)
    z_t = jnp.zeros_like(m)
    at = jnp.zeros_like(m) if alpha is not None else None
    for c in range(C):
        z_c = x_ref[:, c, :, :].astype(jnp.float32) - m
        sumexp = sumexp + jnp.exp(z_c)
        hit = tgt == c
        z_t = jnp.where(hit, z_c, z_t)
        if alpha is not None:
            at = jnp.where(hit, jnp.float32(alpha[c]), at)

    logpt = z_t - jnp.log(sumexp)                           # log p_t
    pt = jnp.exp(logpt)
    if alpha is not None:
        logpt = logpt * at
    omp = 1.0 - pt
    if gamma_is_int:                                        # gamma=2 -> 1 mul
        ig = int(gamma)
        focal = jnp.ones_like(omp) if ig == 0 else omp
        for _ in range(max(0, ig - 1)):
            focal = focal * omp
    else:
        focal = omp ** jnp.float32(gamma)                   # rare non-int path
    loss = -focal * logpt                                   # (BN, ts, 128)

    def _store(l):
        flat = l.reshape(-1, 128)                           # (BN*ts, 128)
        if out_rows == 8:
            out_ref[...] = jnp.sum(flat.reshape(-1, 8, 128), axis=0)
        else:
            out_ref[...] = jnp.sum(flat, axis=0, keepdims=True)

    if needs_mask:
        # Only the last S-tile carries ragged pixels; mask it under pl.when so
        # all other tiles pay zero mask cost.  Keep the select BEFORE the
        # reduction: it also discards garbage/NaN from out-of-bounds reads.
        j = pl.program_id(1)
        last = pl.num_programs(1) - 1

        @pl.when(j == last)
        def _():
            row = lax.broadcasted_iota(jnp.int32, loss.shape, 1)
            lane = lax.broadcasted_iota(jnp.int32, loss.shape, 2)
            hw_idx = (j * ts + row) * 128 + lane
            _store(jnp.where(hw_idx < hw_valid, loss, 0.0))

        @pl.when(j != last)
        def _():
            _store(loss)
    else:
        _store(loss)


def focal_loss(logits, target, gamma=2, alpha=None, size_average=True,
               tile_bytes=None, vmem_limit_bytes=None):
    """Pallas implementation of FocalLoss.forward (returns a scalar).

    Pass logits in their native dtype (bf16 is consumed directly; do NOT
    pre-cast to f32 -- the kernel upcasts per block).
    """
    # ---- flatten to (N, C, hw) keeping NCHW memory order (free reshape) ----
    if logits.ndim > 2:
        N, C = int(logits.shape[0]), int(logits.shape[1])
        hw = 1
        for d in logits.shape[2:]:
            hw *= int(d)
        x = logits.reshape(N, C, hw)
        t = target.reshape(N, hw)
    else:
        N, C = 1, int(logits.shape[1])
        x = logits.T[jnp.newaxis]                           # (1, C, M)
        t = target.reshape(1, -1)
        hw = int(x.shape[2])

    # ---- alpha as trace-time Python constants (None => path removed) -------
    if alpha is None:
        a_list = None
    elif isinstance(alpha, (float, int)):
        a_list = (float(alpha), 1.0 - float(alpha))         # binary case (C==2)
    else:
        a_list = tuple(float(v) for v in alpha)
    if a_list is not None:
        assert len(a_list) == C, "alpha length must match number of classes"

    # ---- pixels-on-lanes layout: (N, C, S, 128) / (N, S, 128) --------------
    hw_pad = pl.cdiv(hw, 128) * 128
    if hw_pad != hw:
        # Rare (H*W not a multiple of 128); costs one extra HBM pass.
        x = jnp.pad(x, ((0, 0), (0, 0), (0, hw_pad - hw)))
        t = jnp.pad(t, ((0, 0), (0, hw_pad - hw)))
    S = hw_pad // 128
    x = x.reshape(N, C, S, 128)
    x_bytes = jnp.dtype(x.dtype).itemsize

    # ---- generation-aware tile / VMEM budget (v7x has 64 MiB, v5e/v6e 128) --
    if tile_bytes is None or vmem_limit_bytes is None:
        try:
            vmem_cap = int(getattr(pltpu.get_tpu_info(), "vmem_capacity_bytes",
                                   64 << 20))
        except Exception:
            vmem_cap = 64 << 20                              # conservative
        if tile_bytes is None:
            tile_bytes = (2 << 20) if vmem_cap <= (64 << 20) else (4 << 20)
        if vmem_limit_bytes is None:
            vmem_limit_bytes = min(int(vmem_cap * 3 // 4), 96 << 20)

    # ---- tile size along S ---------------------------------------------------
    min_ts = 8 if x_bytes >= 4 else (16 if x_bytes == 2 else 32)
    ts = min(2048, max(min_ts, tile_bytes // (C * 128 * x_bytes)))
    ts = (ts // 32) * 32 if ts >= 32 else (ts // min_ts) * min_ts
    if ts >= S:
        ts = S
    T = pl.cdiv(S, ts)

    # keep one grid axis >= 2 when possible (v7x megacore: 2 TensorCores)
    if N == 1 and T == 1 and S >= 64:
        ts = max(32, (pl.cdiv(S, 2) // 32) * 32)
        T = pl.cdiv(S, ts)

    # ---- batch several small images per grid step (amortize ~0.35us/step) ---
    BN = 1
    if T == 1 and N > 1:
        per_img = C * ts * 128 * x_bytes
        if per_img < (256 << 10):
            max_bn = max(1, int(tile_bytes // max(1, per_img)))
            for bn in range(min(N, max_bn), 0, -1):
                if N % bn == 0:
                    BN = bn
                    break
    NG = N // BN

    # ---- int8 targets when the tiling allows it (4x fewer target bytes) -----
    use_i8 = (C <= 127) and (ts % 32 == 0)
    t = t.astype(jnp.int8 if use_i8 else jnp.int32).reshape(N, S, 128)

    needs_mask = (T * ts * 128) != hw
    out_rows = 8 if ts % 8 == 0 else 1

    g = float(gamma)
    kernel = functools.partial(
        _focal_loss_kernel, gamma=g, gamma_is_int=(g == int(g)),
        alpha=a_list, C=C, ts=ts, hw_valid=hw, needs_mask=needs_mask,
        out_rows=out_rows)

    partials = pl.pallas_call(
        kernel,
        out_shape=jax.ShapeDtypeStruct((NG, T, out_rows, 128), jnp.float32),
        grid=(NG, T),
        in_specs=[
            pl.BlockSpec((BN, C, ts, 128), lambda n, j: (n, 0, j, 0)),  # logits
            pl.BlockSpec((BN, ts, 128), lambda n, j: (n, j, 0)),        # targets
        ],
        out_specs=pl.BlockSpec((None, None, out_rows, 128),
                               lambda n, j: (n, j, 0, 0)),
        compiler_params=pltpu.CompilerParams(
            dimension_semantics=("parallel", "parallel"),
            vmem_limit_bytes=int(vmem_limit_bytes)),
    )(x, t)

    total = jnp.sum(partials)                                # tiny XLA reduce
    n_valid = N * hw
    return total / n_valid if size_average else total


def _focal_loss_ref(logits, target, gamma=2, alpha=None, size_average=True):
    """Pure-JAX reference mirroring the PyTorch forward."""
    C = logits.shape[1]
    if logits.ndim > 2:
        x = jnp.transpose(logits.reshape(logits.shape[0], C, -1),
                          (0, 2, 1)).reshape(-1, C)
    else:
        x = logits
    t = target.reshape(-1)
    logp = jax.nn.log_softmax(x.astype(jnp.float32), axis=1)
    logpt = jnp.take_along_axis(logp, t[:, None], axis=1)[:, 0]
    pt = jnp.exp(logpt)
    if alpha is not None:
        a = (jnp.array([alpha, 1.0 - alpha], jnp.float32)
             if isinstance(alpha, (float, int))
             else jnp.asarray(alpha, jnp.float32))
        logpt = logpt * a[t]
    loss = -1.0 * (1.0 - pt) ** gamma * logpt
    return loss.mean() if size_average else loss.sum()


if __name__ == "__main__":
    key = jax.random.PRNGKey(0)
    k1, k2, k3, k4, k5, k6 = jax.random.split(key, 6)

    # --- case 1: NCHW, per-class alpha list, mean reduction -------------------
    N, C, H, W = 2, 4, 16, 16
    logits = jax.random.normal(k1, (N, C, H, W), dtype=jnp.float32)
    target = jax.random.randint(k2, (N, H, W), 0, C, dtype=jnp.int32)
    alpha = [0.25, 0.50, 0.75, 1.00]
    out = jax.block_until_ready(
        focal_loss(logits, target, gamma=2, alpha=alpha, size_average=True))
    ref = _focal_loss_ref(logits, target, gamma=2, alpha=alpha, size_average=True)
    assert jnp.allclose(out, ref, rtol=2e-5, atol=1e-5), (out, ref)

    # --- case 2: alpha=None, sum reduction ------------------------------------
    out2 = jax.block_until_ready(
        focal_loss(logits, target, gamma=2, alpha=None, size_average=False))
    ref2 = _focal_loss_ref(logits, target, gamma=2, alpha=None, size_average=False)
    assert jnp.allclose(out2, ref2, rtol=2e-5, atol=1e-4), (out2, ref2)

    # --- case 3: H*W not a multiple of 128 -> ragged-tail mask path -----------
    N3, C3, H3, W3 = 1, 3, 36, 36
    logits3 = jax.random.normal(k3, (N3, C3, H3, W3), dtype=jnp.float32)
    target3 = jax.random.randint(k4, (N3, H3, W3), 0, C3, dtype=jnp.int32)
    out3 = jax.block_until_ready(
        focal_loss(logits3, target3, gamma=2, alpha=None, size_average=True))
    ref3 = _focal_loss_ref(logits3, target3, gamma=2, alpha=None,
                           size_average=True)
    assert jnp.allclose(out3, ref3, rtol=2e-5, atol=1e-5), (out3, ref3)

    # --- case 4: binary alpha (float), multi-tile grid, int8 targets ----------
    N4, C4, H4, W4 = 1, 2, 128, 128
    logits4 = jax.random.normal(k5, (N4, C4, H4, W4), dtype=jnp.float32)
    target4 = jax.random.randint(k6, (N4, H4, W4), 0, C4, dtype=jnp.int32)
    out4 = jax.block_until_ready(
        focal_loss(logits4, target4, gamma=2, alpha=0.25, size_average=False))
    ref4 = _focal_loss_ref(logits4, target4, gamma=2, alpha=0.25,
                           size_average=False)
    assert jnp.allclose(out4, ref4, rtol=2e-5, atol=1e-3), (out4, ref4)

    print("KERNEL_OK")
</pallas_src>

<mosaic_0001>
module attributes {stable_mosaic.version = 11 : i64} {
  func.func @_focal_loss_kernel(%arg0: i32, %arg1: i32, %arg2: memref<2x4x2x128xf32, #tpu.memory_space<vmem>>, %arg3: memref<2x2x128xi32, #tpu.memory_space<vmem>>, %arg4: memref<1x1x1x128xf32, #tpu.memory_space<vmem>>) attributes {dimension_semantics = [#tpu.dimension_semantics<parallel>, #tpu.dimension_semantics<parallel>], iteration_bounds = array<i64: 1, 1>, scalar_prefetch = 0 : i64, scratch_operands = 0 : i64, tpu.core_type = #tpu.core_type<tc>, window_params = [{transform_indices = @transform_0, window_bounds = array<i64: 2, 4, 2, 128>}, {transform_indices = @transform_1, window_bounds = array<i64: 2, 2, 128>}, {transform_indices = @transform_2, window_bounds = array<i64: 1, 1, 1, 128>}]} {
    %c0 = arith.constant 0 : index
    %c0_0 = arith.constant 0 : index
    %c0_1 = arith.constant 0 : index
    %0 = vector.load %arg3[%c0, %c0_0, %c0_1] : memref<2x2x128xi32, #tpu.memory_space<vmem>>, vector<2x2x128xi32>
    %c0_2 = arith.constant 0 : index
    %c0_3 = arith.constant 0 : index
    %c0_4 = arith.constant 0 : index
    %c0_5 = arith.constant 0 : index
    %1 = vector.load %arg2[%c0_2, %c0_3, %c0_4, %c0_5] : memref<2x4x2x128xf32, #tpu.memory_space<vmem>>, vector<2x1x2x128xf32>
    %2 = vector.shape_cast %1 : vector<2x1x2x128xf32> to vector<2x2x128xf32>
    %c0_6 = arith.constant 0 : index
    %c1 = arith.constant 1 : index
    %c0_7 = arith.constant 0 : index
    %c0_8 = arith.constant 0 : index
    %3 = vector.load %arg2[%c0_6, %c1, %c0_7, %c0_8] : memref<2x4x2x128xf32, #tpu.memory_space<vmem>>, vector<2x1x2x128xf32>
    %4 = vector.shape_cast %3 : vector<2x1x2x128xf32> to vector<2x2x128xf32>
    %5 = arith.maximumf %2, %4 : vector<2x2x128xf32>
    %c0_9 = arith.constant 0 : index
    %c2 = arith.constant 2 : index
    %c0_10 = arith.constant 0 : index
    %c0_11 = arith.constant 0 : index
    %6 = vector.load %arg2[%c0_9, %c2, %c0_10, %c0_11] : memref<2x4x2x128xf32, #tpu.memory_space<vmem>>, vector<2x1x2x128xf32>
    %7 = vector.shape_cast %6 : vector<2x1x2x128xf32> to vector<2x2x128xf32>
    %8 = arith.maximumf %5, %7 : vector<2x2x128xf32>
    %c0_12 = arith.constant 0 : index
    %c3 = arith.constant 3 : index
    %c0_13 = arith.constant 0 : index
    %c0_14 = arith.constant 0 : index
    %9 = vector.load %arg2[%c0_12, %c3, %c0_13, %c0_14] : memref<2x4x2x128xf32, #tpu.memory_space<vmem>>, vector<2x1x2x128xf32>
    %10 = vector.shape_cast %9 : vector<2x1x2x128xf32> to vector<2x2x128xf32>
    %11 = arith.maximumf %8, %10 : vector<2x2x128xf32>
    %cst = arith.constant 0.000000e+00 : f32
    %12 = vector.broadcast %cst : f32 to vector<2x2x128xf32>
    %cst_15 = arith.constant 0.000000e+00 : f32
    %13 = vector.broadcast %cst_15 : f32 to vector<2x2x128xf32>
    %cst_16 = arith.constant 0.000000e+00 : f32
    %14 = vector.broadcast %cst_16 : f32 to vector<2x2x128xf32>
    %c0_17 = arith.constant 0 : index
    %c0_18 = arith.constant 0 : index
    %c0_19 = arith.constant 0 : index
    %c0_20 = arith.constant 0 : index
    %15 = vector.load %arg2[%c0_17, %c0_18, %c0_19, %c0_20] : memref<2x4x2x128xf32, #tpu.memory_space<vmem>>, vector<2x1x2x128xf32>
    %16 = vector.shape_cast %15 : vector<2x1x2x128xf32> to vector<2x2x128xf32>
    %17 = arith.subf %16, %11 : vector<2x2x128xf32>
    %18 = math.exp %17 : vector<2x2x128xf32>
    %19 = arith.addf %12, %18 : vector<2x2x128xf32>
    %c0_i32 = arith.constant 0 : i32
    %20 = vector.broadcast %c0_i32 : i32 to vector<2x2x128xi32>
    %21 = arith.cmpi eq, %0, %20 : vector<2x2x128xi32>
    %22 = arith.select %21, %17, %13 : vector<2x2x128xi1>, vector<2x2x128xf32>
    %cst_21 = arith.constant 2.500000e-01 : f32
    %23 = vector.broadcast %cst_21 : f32 to vector<2x2x128xf32>
    %24 = arith.select %21, %23, %14 : vector<2x2x128xi1>, vector<2x2x128xf32>
    %c0_22 = arith.constant 0 : index
    %c1_23 = arith.constant 1 : index
    %c0_24 = arith.constant 0 : index
    %c0_25 = arith.constant 0 : index
    %25 = vector.load %arg2[%c0_22, %c1_23, %c0_24, %c0_25] : memref<2x4x2x128xf32, #tpu.memory_space<vmem>>, vector<2x1x2x128xf32>
    %26 = vector.shape_cast %25 : vector<2x1x2x128xf32> to vector<2x2x128xf32>
    %27 = arith.subf %26, %11 : vector<2x2x128xf32>
    %28 = math.exp %27 : vector<2x2x128xf32>
    %29 = arith.addf %19, %28 : vector<2x2x128xf32>
    %c1_i32 = arith.constant 1 : i32
    %30 = vector.broadcast %c1_i32 : i32 to vector<2x2x128xi32>
    %31 = arith.cmpi eq, %0, %30 : vector<2x2x128xi32>
    %32 = arith.select %31, %27, %22 : vector<2x2x128xi1>, vector<2x2x128xf32>
    %cst_26 = arith.constant 5.000000e-01 : f32
    %33 = vector.broadcast %cst_26 : f32 to vector<2x2x128xf32>
    %34 = arith.select %31, %33, %24 : vector<2x2x128xi1>, vector<2x2x128xf32>
    %c0_27 = arith.constant 0 : index
    %c2_28 = arith.constant 2 : index
    %c0_29 = arith.constant 0 : index
    %c0_30 = arith.constant 0 : index
    %35 = vector.load %arg2[%c0_27, %c2_28, %c0_29, %c0_30] : memref<2x4x2x128xf32, #tpu.memory_space<vmem>>, vector<2x1x2x128xf32>
    %36 = vector.shape_cast %35 : vector<2x1x2x128xf32> to vector<2x2x128xf32>
    %37 = arith.subf %36, %11 : vector<2x2x128xf32>
    %38 = math.exp %37 : vector<2x2x128xf32>
    %39 = arith.addf %29, %38 : vector<2x2x128xf32>
    %c2_i32 = arith.constant 2 : i32
    %40 = vector.broadcast %c2_i32 : i32 to vector<2x2x128xi32>
    %41 = arith.cmpi eq, %0, %40 : vector<2x2x128xi32>
    %42 = arith.select %41, %37, %32 : vector<2x2x128xi1>, vector<2x2x128xf32>
    %cst_31 = arith.constant 7.500000e-01 : f32
    %43 = vector.broadcast %cst_31 : f32 to vector<2x2x128xf32>
    %44 = arith.select %41, %43, %34 : vector<2x2x128xi1>, vector<2x2x128xf32>
    %c0_32 = arith.constant 0 : index
    %c3_33 = arith.constant 3 : index
    %c0_34 = arith.constant 0 : index
    %c0_35 = arith.constant 0 : index
    %45 = vector.load %arg2[%c0_32, %c3_33, %c0_34, %c0_35] : memref<2x4x2x128xf32, #tpu.memory_space<vmem>>, vector<2x1x2x128xf32>
    %46 = vector.shape_cast %45 : vector<2x1x2x128xf32> to vector<2x2x128xf32>
    %47 = arith.subf %46, %11 : vector<2x2x128xf32>
    %48 = math.exp %47 : vector<2x2x128xf32>
    %49 = arith.addf %39, %48 : vector<2x2x128xf32>
    %c3_i32 = arith.constant 3 : i32
    %50 = vector.broadcast %c3_i32 : i32 to vector<2x2x128xi32>
    %51 = arith.cmpi eq, %0, %50 : vector<2x2x128xi32>
    %52 = arith.select %51, %47, %42 : vector<2x2x128xi1>, vector<2x2x128xf32>
    %cst_36 = arith.constant 1.000000e+00 : f32
    %53 = vector.broadcast %cst_36 : f32 to vector<2x2x128xf32>
    %54 = arith.select %51, %53, %44 : vector<2x2x128xi1>, vector<2x2x128xf32>
    %55 = math.log %49 : vector<2x2x128xf32>
    %56 = arith.subf %52, %55 : vector<2x2x128xf32>
    %57 = math.exp %56 : vector<2x2x128xf32>
    %58 = arith.mulf %56, %54 : vector<2x2x128xf32>
    %cst_37 = arith.constant 1.000000e+00 : f32
    %59 = vector.broadcast %cst_37 : f32 to vector<2x2x128xf32>
    %60 = arith.subf %59, %57 : vector<2x2x128xf32>
    %61 = arith.mulf %60, %60 : vector<2x2x128xf32>
    %cst_38 = arith.constant 0.000000e+00 : f32
    %62 = vector.broadcast %cst_38 : f32 to vector<2x2x128xf32>
    %63 = arith.subf %62, %61 : vector<2x2x128xf32>
    %64 = arith.mulf %63, %58 : vector<2x2x128xf32>
    %65 = vector.shape_cast %64 : vector<2x2x128xf32> to vector<4x128xf32>
    %cst_39 = arith.constant dense<0.000000e+00> : vector<128xf32>
    %66 = vector.multi_reduction <add>, %65, %cst_39 [0] : vector<4x128xf32> to vector<128xf32>
    %67 = vector.shape_cast %66 : vector<128xf32> to vector<1x128xf32>
    %c0_40 = arith.constant 0 : index
    %c0_41 = arith.constant 0 : index
    %c0_42 = arith.constant 0 : index
    %c0_43 = arith.constant 0 : index
    %68 = vector.load %arg4[%c0_40, %c0_41, %c0_42, %c0_43] : memref<1x1x1x128xf32, #tpu.memory_space<vmem>>, vector<1x1x1x128xf32>
    %69 = vector.shape_cast %68 : vector<1x1x1x128xf32> to vector<1x128xf32>
    %70 = vector.shape_cast %67 : vector<1x128xf32> to vector<1x1x1x128xf32>
    tpu.vector_store %arg4[%c0_40, %c0_41, %c0_42, %c0_43], %70 {strides = array<i32>} : memref<1x1x1x128xf32, #tpu.memory_space<vmem>>, vector<1x1x1x128xf32>,
    return
  }
  func.func @transform_0(%arg0: i32, %arg1: i32) -> (i32, i32, i32, i32) {
    %c0_i32 = arith.constant 0 : i32
    %c0_i32_0 = arith.constant 0 : i32
    %c0_i32_1 = arith.constant 0 : i32
    return %arg0, %c0_i32, %arg1, %c0_i32_0 : i32, i32, i32, i32
  }
  func.func @transform_1(%arg0: i32, %arg1: i32) -> (i32, i32, i32) {
    %c0_i32 = arith.constant 0 : i32
    %c0_i32_0 = arith.constant 0 : i32
    return %arg0, %arg1, %c0_i32 : i32, i32, i32
  }
  func.func @transform_2(%arg0: i32, %arg1: i32) -> (i32, i32, i32, i32) {
    %c0_i32 = arith.constant 0 : i32
    %c0_i32_0 = arith.constant 0 : i32
    %c0_i32_1 = arith.constant 0 : i32
    return %arg0, %arg1, %c0_i32, %c0_i32_0 : i32, i32, i32, i32
  }
}

</mosaic_0001>

<bundles_post_ra>
// kernel: tpu_custom_call.1
= control target key start
LH: loop header
LB: loop body
LE: loop exit
PB: predicated region body
PF: predicated region fallthrough
CT: control target
= control target key end

     0   :  { %7 = vsyncpa [#allocation3], 0  ;;  %s348_s0 = inlined_call_operand.hbm [shape: f32[2,4,2,128], index: 0, kind: input, shape index: {}]   ;;  %s349_s1 = inlined_call_operand.hbm [shape: s32[2,2,128], index: 1, kind: input, shape index: {}]   ;;  %s350_s2 = inlined_call_operand.hbm [shape: f32[1,1,1,128], index: 2, kind: output, shape index: {}]  }
   0x1   :  { %8 = vsyncpa [#allocation6], 0 }
   0x2   :  { %9 = vsyncpa [#allocation4], 0  ;;  %s274_s9 = smov [#allocation2]   ;;  %s202_s13 = scalar_lea.hbm %s348_s0, 256 }
   0x3   :  { %s15_s10 = sshll.u32 %s274_s9, 4  ;;  %p203_p0 = scmp.ne.s32.totalorder %s348_s0, %s202_s13  ;;  %s16_s10 = int_to_ptr.vmem [resolvable:$true] %s15_s10 }
   0x4   :  { %p206_p1 = scmp.lt.u32.totalorder %s202_s13, %s348_s0 }
   0x6   :  { %p208_p2 = pnand %p206_p1, %p203_p0 }
   0x8   :  { %211 = shalt.err (!%p208_p2)
}
   0x9   :  { %s212_s18 = scalar_lea.vmem %s16_s10, 256  ;;  %p217_p4 = scmp.lt.s32.totalorder %s16_s10, %s16_s10 }
   0xa   :  { %p213_p3 = scmp.ne.s32.totalorder %s16_s10, %s212_s18  ;;  %p218_p5 = scmp.lt.s32.totalorder %s212_s18, %s212_s18 }
   0xc   :  { %p219_p6 = por %p218_p5, %p217_p4 }
   0xe   :  { %p220_p7 = pnand %p219_p6, %p213_p3 }
  0x10   :  { %223 = shalt.err (!%p220_p7)
}
  0x11   :  { %s275_s19 = smov 32   ;;  %s276_s20 = smov 2  }
  0x12   :  { %21 = dma.hbm_to_vmem [thread:$0]  %s348_s0, 256, %s16_s10, [#allocation3], %s275_s19, %s275_s19, %s276_s20  }
  0x13   :  { %s277_s23 = smov [#allocation5]   ;;  %s224_s27 = scalar_lea.hbm %s349_s1, 64 }
  0x14   :  { %s27_s24 = sshll.u32 %s277_s23, 4  ;;  %p225_p8 = scmp.ne.s32.totalorder %s349_s1, %s224_s27  ;;  %s28_s24 = int_to_ptr.vmem [resolvable:$true] %s27_s24 }
  0x15   :  { %p228_p9 = scmp.lt.u32.totalorder %s224_s27, %s349_s1 }
  0x17   :  { %p230_p10 = pnand %p228_p9, %p225_p8 }
  0x19   :  { %233 = shalt.err (!%p230_p10)
}
  0x1a   :  { %s234_s4 = scalar_lea.vmem %s28_s24, 64  ;;  %p239_p12 = scmp.lt.s32.totalorder %s28_s24, %s28_s24 }
  0x1b   :  { %p235_p11 = scmp.ne.s32.totalorder %s28_s24, %s234_s4  ;;  %p240_p13 = scmp.lt.s32.totalorder %s234_s4, %s234_s4 }
  0x1d   :  { %p241_p0 = por %p240_p13, %p239_p12 }
  0x1f   :  { %p242_p1 = pnand %p241_p0, %p235_p11 }
  0x21   :  { %245 = shalt.err (!%p242_p1)
}
  0x22   :  { %33 = dma.hbm_to_vmem [thread:$0]  %s349_s1, 64, %s28_s24, [#allocation6], %s275_s19, %s275_s19, %s276_s20  }
  0x23   :  { %268 = dma.done.wait [#allocation3], 256  }
  0x24   :  { %269 = vsyncadd [#allocation3], 4294967040 }
  0x25   :  { %270 = dma.done.wait [#allocation6], 64  }
  0x26   :  { %271 = vsyncadd [#allocation6], 4294967232  ;;  %v42_v0 = vld [vmem:[#allocation2] sm:$0x3]  ;;  %v43_v1 = vld [vmem:[#allocation2 + $0x8] sm:$0x3] }
  0x27   :  { %v45_v2 = vld [vmem:[#allocation2 + $0x2] sm:$0x3]  ;;  %v46_v3 = vld [vmem:[#allocation2 + $0xa] sm:$0x3]  ;;  %v50_v6 = vld [vmem:[#allocation2 + $0x4] sm:$0x3] }
  0x28   :  { %v47_v4 = vmax.f32 %v42_v0, %v45_v2  ;;  %v48_v5 = vmax.f32 %v43_v1, %v46_v3  ;;  %v51_v7 = vld [vmem:[#allocation2 + $0xc] sm:$0x3]  ;;  %v55_v8 = vld [vmem:[#allocation2 + $0x6] sm:$0x3]  ;;  %v56_v9 = vld [vmem:[#allocation2 + $0xe] sm:$0x3] }
  0x29   :  { %v40_v36 = vld [vmem:[#allocation5] sm:$0x3]  ;;  %v41_v39 = vld [vmem:[#allocation5 + $0x2] sm:$0x3]  ;;  %v278_v62 = vmov 0.0   ;;  %vm146_vm8 = vcmask 1043456  }
  0x2a   :  { %v52_v10 = vmax.f32 %v47_v4, %v50_v6  ;;  %v53_v11 = vmax.f32 %v48_v5, %v51_v7  ;;  %vm67_vm0 = vcmp.eq.s32.totalorder %v40_v36, 0  ;;  %vm68_vm1 = vcmp.eq.s32.totalorder %v41_v39, 0  ;;  %s280_s1 = smov [#allocation7]  }
  0x2b   :  { %vm81_vm2 = vcmp.eq.s32.totalorder %v40_v36, 1  ;;  %vm82_vm3 = vcmp.eq.s32.totalorder %v41_v39, 1  ;;  %vm95_vm4 = vcmp.eq.s32.totalorder %v40_v36, 2  ;;  %vm96_vm5 = vcmp.eq.s32.totalorder %v41_v39, 2  ;;  %s161_s6 = sshll.u32 %s280_s1, 4  ;;  %s162_s6 = int_to_ptr.vmem [resolvable:$true] %s161_s6 }
  0x2c   :  { %v57_v12 = vmax.f32 %v52_v10, %v55_v8  ;;  %v58_v13 = vmax.f32 %v53_v11, %v56_v9  ;;  %vm109_vm6 = vcmp.eq.s32.totalorder %v40_v36, 3  ;;  %vm110_vm7 = vcmp.eq.s32.totalorder %v41_v39, 3  ;;  %s246_s7 = scalar_lea.vmem %s162_s6, 16  ;;  %s250_s8 = scalar_lea.vmem %s162_s6, 32 }
  0x2d   :  { %v71_v63 = vsel %vm67_vm0, 0.25, %v278_v62  ;;  %p247_p2 = scmp.ne.s32.totalorder %s162_s6, %s246_s7  ;;  %p251_p3 = scmp.lt.s32.totalorder %s162_s6, %s162_s6 }
  0x2e   :  { %v59_v14 = vsub.f32 %v42_v0, %v57_v12  ;;  %v60_v15 = vsub.f32 %v43_v1, %v58_v13  ;;  %v73_v16 = vsub.f32 %v45_v2, %v57_v12  ;;  %v74_v17 = vsub.f32 %v46_v3, %v58_v13  ;;  %p252_p4 = scmp.lt.s32.totalorder %s250_s8, %s246_s7 }
  0x2f   :  { %v87_v18 = vsub.f32 %v50_v6, %v57_v12  ;;  %v88_v19 = vsub.f32 %v51_v7, %v58_v13  ;;  %v101_v22 = vsub.f32 %v55_v8, %v57_v12  ;;  %v102_v25 = vsub.f32 %v56_v9, %v58_v13 }
  0x30   :  { %v61_v20 = vmul.f32 1.442695, %v59_v14  ;;  %v63_v21 = vmul.f32 1.442695, %v60_v15  ;;  %v75_v23 = vmul.f32 1.442695, %v73_v16  ;;  %v141_v9 = vlaneseq  ;;  %p253_p5 = por %p252_p4, %p251_p3 }
  0x31   :  { %v77_v24 = vmul.f32 1.442695, %v74_v17  ;;  %v89_v26 = vmul.f32 1.442695, %v87_v18  ;;  %v91_v27 = vmul.f32 1.442695, %v88_v19 }
  0x32   :  { %178 = vpow2.f32 %v61_v20  ;;  %v103_v28 = vmul.f32 1.442695, %v101_v22  ;;  %v105_v29 = vmul.f32 1.442695, %v102_v25  ;;  %v69_v46 = vsel %vm67_vm0, %v59_v14, 0.0  ;;  %p254_p6 = pnand %p253_p5, %p247_p2 }
  0x33   :  { %180 = vpow2.f32 %v63_v21  ;;  %v70_v47 = vsel %vm68_vm1, %v60_v15, 0.0  ;;  %v83_v48 = vsel %vm81_vm2, %v73_v16, %v69_v46  ;;  %v72_v0 = vsel %vm68_vm1, 0.25, %v278_v62 }
  0x34   :  { %182 = vpow2.f32 %v75_v23  ;;  %v84_v49 = vsel %vm82_vm3, %v74_v17, %v70_v47  ;;  %v97_v50 = vsel %vm95_vm4, %v87_v18, %v83_v48  ;;  %v85_v1 = vsel %vm81_vm2, 0.5, %v71_v63 }
  0x35   :  { %184 = vpow2.f32 %v77_v24  ;;  %v98_v51 = vsel %vm96_vm5, %v88_v19, %v84_v49  ;;  %v111_v53 = vsel %vm109_vm6, %v101_v22, %v97_v50  ;;  %v86_v2 = vsel %vm82_vm3, 0.5, %v72_v0 }
  0x36   :  { %186 = vpow2.f32 %v89_v26  ;;  %v112_v55 = vsel %vm110_vm7, %v102_v25, %v98_v51  ;;  %v99_v3 = vsel %vm95_vm4, 0.75, %v85_v1  ;;  %v100_v4 = vsel %vm96_vm5, 0.75, %v86_v2 }
  0x37   :  { %188 = vpow2.f32 %v91_v27  ;;  %v113_v6 = vsel %vm109_vm6, 1.0, %v99_v3  ;;  %v279_v7 = vmov 1983009808   ;;  %v114_v11 = vsel %vm110_vm7, 1.0, %v100_v4 }
  0x38   :  { %190 = vpow2.f32 %v103_v28  ;;  %v139_v8 = vunpack.c.l.s4 %v279_v7  ;;  %v142_v19 = vshrl.u32 %v141_v9, 7 }
  0x39   :  { %192 = vpow2.f32 %v105_v29 }
  0x3a   :  { %v140_v18 = vunpack.c.0.s8 %v139_v8 }
  0x3c   :  { %v179_v30 = vpop.eup %178  ;;  %v143_v24 = vsub.s32 %v140_v18, %v142_v19 }
  0x3d   :  { %v181_v31 = vpop.eup %180 }
  0x3e   :  { %v183_v32 = vpop.eup %182 }
  0x3f   :  { %v185_v33 = vpop.eup %184  ;;  %v79_v34 = vadd.f32 %v183_v32, %v179_v30 }
  0x40   :  { %v187_v35 = vpop.eup %186  ;;  %v80_v37 = vadd.f32 %v185_v33, %v181_v31 }
  0x41   :  { %v189_v38 = vpop.eup %188  ;;  %v93_v40 = vadd.f32 %v187_v35, %v79_v34 }
  0x42   :  { %v191_v41 = vpop.eup %190  ;;  %v94_v42 = vadd.f32 %v189_v38, %v80_v37 }
  0x43   :  { %v193_v43 = vpop.eup %192  ;;  %v107_v44 = vadd.f32 %v191_v41, %v93_v40 }
  0x44   :  { %v108_v45 = vadd.f32 %v193_v43, %v94_v42 }
  0x45   :  { %194 = vlog2.f32 %v107_v44 }
  0x46   :  { %196 = vlog2.f32 %v108_v45 }
  0x4f   :  { %v195_v52 = vpop.eup %194 }
  0x50   :  { %v197_v54 = vpop.eup %196  ;;  %v116_v56 = vmul.f32 0.6931472, %v195_v52 }
  0x51   :  { %v118_v57 = vmul.f32 0.6931472, %v197_v54 }
  0x52   :  { %v119_v58 = vsub.f32 %v111_v53, %v116_v56 }
  0x53   :  { %v120_v59 = vsub.f32 %v112_v55, %v118_v57 }
  0x54   :  { %v121_v60 = vmul.f32 1.442695, %v119_v58  ;;  %v125_v14 = vmul.f32 %v119_v58, %v113_v6 }
  0x55   :  { %v123_v61 = vmul.f32 1.442695, %v120_v59  ;;  %v126_v16 = vmul.f32 %v120_v59, %v114_v11 }
  0x56   :  { %198 = vpow2.f32 %v121_v60 }
  0x57   :  { %200 = vpow2.f32 %v123_v61 }
  0x60   :  { %v199_v5 = vpop.eup %198 }
  0x61   :  { %v201_v10 = vpop.eup %200  ;;  %v127_v12 = vsub.f32 1.0, %v199_v5 }
  0x62   :  { %v128_v13 = vsub.f32 1.0, %v201_v10 }
  0x63   :  { %v129_v15 = vmul.f32 %v127_v12, %v127_v12 }
  0x64   :  { %v130_v17 = vmul.f32 %v128_v13, %v128_v13 }
  0x65   :  { %v131_v20 = vsub.f32 0.0, %v129_v15 }
  0x66   :  { %v132_v21 = vsub.f32 0.0, %v130_v17 }
  0x67   :  { %v133_v22 = vmul.f32 %v131_v20, %v125_v14 }
  0x68   :  { %v134_v23 = vmul.f32 %v132_v21, %v126_v16 }
  0x6a   :  { %v137_v25 = vcombine.low %v133_v22, %v134_v23 }
  0x6c   :  { %v144_v26 = vrot.slane %v137_v25, %v143_v24 }
  0x6e   :  { %v147_v27 = vsel %vm146_vm8, %v144_v26, 0.0 }
  0x6f   :  { %v148_v28 = vrot.slane %v147_v27, 4 }
  0x71   :  { %v149_v29 = vadd.f32 %v148_v28, %v147_v27 }
  0x73   :  { %v150_v30 = vrot.slane %v149_v29, 2 }
  0x75   :  { %v151_v31 = vadd.f32 %v150_v30, %v149_v29 }
  0x77   :  { %v152_v32 = vrot.slane %v151_v31, 1 }
  0x79   :  { %v153_v33 = vadd.f32 %v152_v32, %v151_v31 }
  0x7b   :  { %154 = vst [vmem:[#allocation7] sm:$0x1] %v153_v33 }
  0x7c   :  { %257 = shalt.err (!%p254_p6)
}
  0x7d   :  { %s258_s11 = scalar_lea.hbm %s350_s2, 16 }
  0x7e   :  { %p259_p7 = scmp.ne.s32.totalorder %s350_s2, %s258_s11  ;;  %p262_p8 = scmp.lt.u32.totalorder %s258_s11, %s350_s2 }
  0x80   :  { %p264_p9 = pnand %p262_p8, %p259_p7 }
  0x82   :  { %267 = shalt.err (!%p264_p9)
}
  0x83   :  { %164 = dma.vmem_to_hbm [thread:$0]  %s162_s6, 16, %s350_s2, [#allocation4]  }
  0x84   :  { %272 = dma.done.wait [#allocation4], 16  }
  0x85   :  { %273 = vsyncadd [#allocation4], 4294967280 }
  0x86   :  { %168 = vsyncpa [#allocation3], 1 }
  0x87   :  { %169 = vsyncpa [#allocation6], 1 }
  0x88   :  { %170 = vsyncpa [#allocation4], 1 }

</bundles_post_ra>
